<compile_context>
chip_gen: v6e
topology: v6e:2x2x1
jax: 0.10.0
libtpu: 0.0.40
codegen_flags: <defaults>
</compile_context>

<pallas_src>
import functools

import jax
import jax.numpy as jnp
from jax.experimental import pallas as pl
from jax.experimental.pallas import tpu as pltpu

MARGIN = 10.0


def _round_up(x, m):
    return ((x + m - 1) // m) * m


# ---------------------------------------------------------------------------
# Kernel 1 (large-batch path): per-unique-positive energy  -> (len_pos, 1) f32
# ---------------------------------------------------------------------------
def pos_energy_kernel(hs_ref, ts_ref, hi_ref, ti_ref, r_ref, out_ref):
    f32 = jnp.float32
    hs = hs_ref[...].astype(f32)
    ts = ts_ref[...].astype(f32)
    hi = hi_ref[...].astype(f32)
    ti = ti_ref[...].astype(f32)
    r = r_ref[...].astype(f32)
    a = hs + r                      # h_s + r   (shared by two energies)
    b = hi + r                      # h_i + r
    s = (jnp.abs(a - ts) + jnp.abs(a - ti)
         + jnp.abs(b - ts) + jnp.abs(b - ti))          # (tm, D) elementwise
    out_ref[...] = jnp.sum(s, axis=1, keepdims=True)    # single cross-lane reduce


# ---------------------------------------------------------------------------
# Kernel 2: negative energies + margin-ranking loss partial sum
# ---------------------------------------------------------------------------
def ikrl_neg_loss_kernel(epos_ref, hsn_ref, tsn_ref, hin_ref, tin_ref, rn_ref,
                         out_ref, acc_ref, *, red_axis):
    f32 = jnp.float32
    j = pl.program_id(red_axis)          # reduction (row-tile) axis

    @pl.when(j == 0)
    def _():
        acc_ref[...] = jnp.zeros_like(acc_ref)

    hs = hsn_ref[...].astype(f32)
    ts = tsn_ref[...].astype(f32)
    hi = hin_ref[...].astype(f32)
    ti = tin_ref[...].astype(f32)
    r = rn_ref[...].astype(f32)

    a = hs + r
    b = hi + r
    s = (jnp.abs(a - ts) + jnp.abs(a - ti)
         + jnp.abs(b - ts) + jnp.abs(b - ti))            # (tm, D)
    e_neg = jnp.sum(s, axis=1, keepdims=True)            # (tm, 1)
    e_pos = epos_ref[...]                                 # (tm, 1) f32; padded rows = -1e30

    # margin_ranking_loss(x1=e_pos, x2=e_neg, y=-1, margin=10):
    #   max(0, -y*(x1-x2) + margin) = max(0, e_pos - e_neg + 10)
    # Padded rows carry e_pos = -1e30 -> margin exactly 0, no mask needed.
    margins = jnp.maximum(e_pos - e_neg + MARGIN, 0.0)    # (tm, 1)
    acc_ref[...] += margins                               # elementwise accumulate

    @pl.when(j == pl.num_programs(red_axis) - 1)
    def _():
        out_ref[...] = jnp.sum(acc_ref[...], keepdims=True)   # (1, 1) partial sum


# ---------------------------------------------------------------------------
# Wrapper: gathers / padding glue + pallas_calls
# ---------------------------------------------------------------------------
def ikrl_loss(batch_inputs, entity_emb, relation_emb, img_entity_emb, neg_num,
              *, tm=2048, n_cores=1, stream_dtype=jnp.bfloat16,
              pos_kernel_min_rows=4096):
    """Forward pass of IKRL (returns scalar margin-ranking loss).

    n_cores=1 for single-TensorCore chips (v5e/v6e); n_cores=2 on v7x uses a real
    CORE_PARALLEL split of the row-tile grid across both TensorCores.
    """
    f32 = jnp.float32
    B = batch_inputs.shape[0]
    len_pos = B // (neg_num + 1)
    n = neg_num * len_pos
    D = entity_emb.shape[1]

    pos = batch_inputs[:len_pos]
    neg = batch_inputs[len_pos:]

    itemsize = jnp.dtype(stream_dtype).itemsize
    row_align = 8 * max(1, 4 // itemsize)        # packed-sublane alignment (bf16 -> 16)

    def gather(table, idx):
        # cast after the gather; XLA fuses the convert into the gather output
        return table[idx].astype(stream_dtype)

    # ---- positive side: UNIQUE triples only (no neg_num duplication) ----
    if len_pos >= pos_kernel_min_rows:
        lp_tm = _round_up(min(tm, len_pos), row_align)
        lp_pad = _round_up(len_pos, lp_tm)
        pos_idx = jnp.pad(pos, ((0, lp_pad - len_pos), (0, 0)))   # pad indices w/ 0
        hsp = gather(entity_emb, pos_idx[:, 0])
        tsp = gather(entity_emb, pos_idx[:, 2])
        hip = gather(img_entity_emb, pos_idx[:, 0])
        tip = gather(img_entity_emb, pos_idx[:, 2])
        rp = gather(relation_emb, pos_idx[:, 1])

        pos_row_spec = pl.BlockSpec((lp_tm, D), lambda i: (i, 0))
        e_pos_u = pl.pallas_call(
            pos_energy_kernel,
            out_shape=jax.ShapeDtypeStruct((lp_pad, 1), f32),
            grid_spec=pltpu.PrefetchScalarGridSpec(
                num_scalar_prefetch=0,
                grid=(lp_pad // lp_tm,),
                in_specs=[pos_row_spec] * 5,
                out_specs=pl.BlockSpec((lp_tm, 1), lambda i: (i, 0)),
            ),
            compiler_params=pltpu.CompilerParams(
                dimension_semantics=("parallel",)),
        )(hsp, tsp, hip, tip, rp)[:len_pos, 0]                    # (len_pos,)
    else:
        # small len_pos: fused plain JAX is as fast and skips a kernel launch
        hsp = gather(entity_emb, pos[:, 0]).astype(f32)
        tsp = gather(entity_emb, pos[:, 2]).astype(f32)
        hip = gather(img_entity_emb, pos[:, 0]).astype(f32)
        tip = gather(img_entity_emb, pos[:, 2]).astype(f32)
        rp = gather(relation_emb, pos[:, 1]).astype(f32)
        a = hsp + rp
        b = hip + rp
        s = (jnp.abs(a - tsp) + jnp.abs(a - tip)
             + jnp.abs(b - tsp) + jnp.abs(b - tip))
        e_pos_u = jnp.sum(s, axis=1)                               # (len_pos,)

    # .repeat(neg_num, 1) on the positive triples == tiling the per-positive energies
    e_pos = jnp.tile(e_pos_u, (neg_num,))                          # (n,)

    # ---- negative side tiling ----
    # VMEM per row (double-buffered inputs + lane-padded e_pos bufs + accumulator)
    bytes_per_row = 5 * 2 * D * itemsize + 2 * 128 * 4 + 128 * 4
    vmem_budget = 40 * 1024 * 1024          # fits v7x's 64 MiB as well as v5e/v6e
    tm_cap = max(row_align, vmem_budget // bytes_per_row)
    rows_per_core = -(-n // n_cores)
    tm_eff = _round_up(max(1, min(tm, tm_cap, rows_per_core)), row_align)
    tiles_per_core = -(-n // (n_cores * tm_eff))
    n_pad = n_cores * tiles_per_core * tm_eff

    # pad the INDEX arrays (free) so the gather writes straight into padded buffers
    neg_idx = jnp.pad(neg, ((0, n_pad - n), (0, 0)))
    hsn = gather(entity_emb, neg_idx[:, 0])
    tsn = gather(entity_emb, neg_idx[:, 2])
    hin = gather(img_entity_emb, neg_idx[:, 0])
    tin = gather(img_entity_emb, neg_idx[:, 2])
    rn = gather(relation_emb, neg_idx[:, 1])

    # padded tail rows get e_pos = -1e30 -> ReLU'd margin is exactly 0 (no mask)
    e_pos_pad = jnp.pad(e_pos[:, None].astype(f32),
                        ((0, n_pad - n), (0, 0)), constant_values=-1e30)

    if n_cores == 1:
        grid = (tiles_per_core,)
        red_axis = 0
        row_spec = pl.BlockSpec((tm_eff, D), lambda j: (j, 0))
        epos_spec = pl.BlockSpec((tm_eff, 1), lambda j: (j, 0))
        out_spec = pl.BlockSpec((1, 1), lambda j: (0, 0))
        out_shape = jax.ShapeDtypeStruct((1, 1), f32)
        dim_sem = ("arbitrary",)
    else:
        grid = (n_cores, tiles_per_core)
        red_axis = 1
        row_spec = pl.BlockSpec(
            (tm_eff, D), lambda c, j: (c * tiles_per_core + j, 0))
        epos_spec = pl.BlockSpec(
            (tm_eff, 1), lambda c, j: (c * tiles_per_core + j, 0))
        out_spec = pl.BlockSpec((1, 1), lambda c, j: (c, 0))
        out_shape = jax.ShapeDtypeStruct((n_cores, 1), f32)
        # real per-TensorCore sharding of the leading axis (v7x)
        dim_sem = (pltpu.CORE_PARALLEL, pltpu.ARBITRARY)

    vmem_limit = int(min(48 * 1024 * 1024,
                         max(32 * 1024 * 1024, 2 * bytes_per_row * tm_eff)))

    kernel = functools.partial(ikrl_neg_loss_kernel, red_axis=red_axis)
    partials = pl.pallas_call(
        kernel,
        out_shape=out_shape,
        grid_spec=pltpu.PrefetchScalarGridSpec(
            num_scalar_prefetch=0,
            grid=grid,
            in_specs=[epos_spec] + [row_spec] * 5,
            out_specs=out_spec,
            scratch_shapes=[pltpu.VMEM((tm_eff, 1), f32)],
        ),
        compiler_params=pltpu.CompilerParams(
            dimension_semantics=dim_sem,
            vmem_limit_bytes=vmem_limit),
    )(e_pos_pad, hsn, tsn, hin, tin, rn)

    return jnp.sum(partials) / jnp.float32(n)            # mean reduction


# ---------------------------------------------------------------------------
# Pure-JAX reference mirroring the PyTorch forward
# ---------------------------------------------------------------------------
def _reference_loss(batch_inputs, entity_emb, relation_emb, img_entity_emb,
                    neg_num, cast_dtype=None):
    f32 = jnp.float32
    B = batch_inputs.shape[0]
    len_pos = B // (neg_num + 1)
    pos = jnp.tile(batch_inputs[:len_pos], (neg_num, 1))
    neg = batch_inputs[len_pos:]

    def emb(table, idx):
        e = table[idx]
        if cast_dtype is not None:
            e = e.astype(cast_dtype)
        return e.astype(f32)

    def l1(h, r, t):
        return jnp.sum(jnp.abs(h + r - t), axis=1)

    rp, rn = emb(relation_emb, pos[:, 1]), emb(relation_emb, neg[:, 1])
    hsp, tsp = emb(entity_emb, pos[:, 0]), emb(entity_emb, pos[:, 2])
    hsn, tsn = emb(entity_emb, neg[:, 0]), emb(entity_emb, neg[:, 2])
    hip, tip = emb(img_entity_emb, pos[:, 0]), emb(img_entity_emb, pos[:, 2])
    hin, tin = emb(img_entity_emb, neg[:, 0]), emb(img_entity_emb, neg[:, 2])

    e_pos = l1(hsp, rp, tsp) + l1(hsp, rp, tip) + l1(hip, rp, tsp) + l1(hip, rp, tip)
    e_neg = l1(hsn, rn, tsn) + l1(hsn, rn, tin) + l1(hin, rn, tsn) + l1(hin, rn, tin)
    return jnp.mean(jnp.maximum(e_pos - e_neg + MARGIN, 0.0))


if __name__ == "__main__":
    key = jax.random.PRNGKey(0)
    k_ent, k_rel, k_img, k_h, k_r, k_t = jax.random.split(key, 6)

    # synthetic module config (small, consistent with the PyTorch __init__):
    num_entities = 10
    num_relations = 5
    dim = 256          # entity dim; img embeddings are 16*16 = 256 after 4x4 avg-pool
    r_dim = 256
    neg_num = 2
    len_pos = 5
    batch_size = (neg_num + 1) * len_pos   # 15 triples, first len_pos are positives

    entity_emb = jax.random.normal(k_ent, (num_entities, dim), jnp.float32) * 0.1
    relation_emb = jax.random.normal(k_rel, (num_relations, r_dim), jnp.float32) * 0.1

    # img_entity_embeddings = AvgPool2d(4, stride=4) over (E, 64, 64), flattened
    # TODO(synk): the AvgPool preprocessing is a one-time Embedding init, kept in JAX.
    img = jax.random.normal(k_img, (num_entities, 64, 64), jnp.float32)
    img_pooled = img.reshape(num_entities, 16, 4, 16, 4).mean(axis=(2, 4))
    img_entity_emb = img_pooled.reshape(num_entities, -1)      # (E, 256)

    heads = jax.random.randint(k_h, (batch_size,), 0, num_entities)
    rels = jax.random.randint(k_r, (batch_size,), 0, num_relations)
    tails = jax.random.randint(k_t, (batch_size,), 0, num_entities)
    batch_inputs = jnp.stack([heads, rels, tails], axis=1).astype(jnp.int32)  # (B, 3)

    # default path (fused-JAX positive energies, Pallas negative/loss kernel)
    loss = ikrl_loss(batch_inputs, entity_emb, relation_emb, img_entity_emb, neg_num)
    loss = jax.block_until_ready(loss)

    # also exercise the Pallas positive-energy kernel path
    loss2 = ikrl_loss(batch_inputs, entity_emb, relation_emb, img_entity_emb,
                      neg_num, pos_kernel_min_rows=1)
    loss2 = jax.block_until_ready(loss2)

    # exact semantics the kernel implements: bf16-streamed gathers, f32 math
    ref_bf16 = _reference_loss(batch_inputs, entity_emb, relation_emb,
                               img_entity_emb, neg_num, cast_dtype=jnp.bfloat16)
    # original f32 module semantics (loose tolerance for bf16 streaming)
    ref_f32 = _reference_loss(batch_inputs, entity_emb, relation_emb,
                              img_entity_emb, neg_num)

    assert jnp.allclose(loss, ref_bf16, rtol=1e-4, atol=1e-3), (loss, ref_bf16)
    assert jnp.allclose(loss2, ref_bf16, rtol=1e-4, atol=1e-3), (loss2, ref_bf16)
    assert jnp.allclose(loss, ref_f32, rtol=2e-2, atol=5e-1), (loss, ref_f32)

    print("KERNEL_OK")
</pallas_src>

<mosaic_0001>
module attributes {stable_mosaic.version = 11 : i64} {
  func.func @ikrl_neg_loss_kernel(%arg0: i32, %arg1: memref<16x1xf32, #tpu.memory_space<vmem>>, %arg2: memref<16x256xbf16, #tpu.memory_space<vmem>>, %arg3: memref<16x256xbf16, #tpu.memory_space<vmem>>, %arg4: memref<16x256xbf16, #tpu.memory_space<vmem>>, %arg5: memref<16x256xbf16, #tpu.memory_space<vmem>>, %arg6: memref<16x256xbf16, #tpu.memory_space<vmem>>, %arg7: memref<1x1xf32, #tpu.memory_space<vmem>>, %arg8: memref<16x1xf32, #tpu.memory_space<vmem>>) attributes {dimension_semantics = [#tpu.dimension_semantics<arbitrary>], iteration_bounds = array<i64: 1>, scalar_prefetch = 0 : i64, scratch_operands = 1 : i64, tpu.core_type = #tpu.core_type<tc>, window_params = [{transform_indices = @transform_0, window_bounds = array<i64: 16, 1>}, {transform_indices = @transform_1, window_bounds = array<i64: 16, 256>}, {transform_indices = @transform_2, window_bounds = array<i64: 16, 256>}, {transform_indices = @transform_3, window_bounds = array<i64: 16, 256>}, {transform_indices = @transform_4, window_bounds = array<i64: 16, 256>}, {transform_indices = @transform_5, window_bounds = array<i64: 16, 256>}, {pipeline_mode = #tpu.pipeline_mode<synchronous>, transform_indices = @transform_6, window_bounds = array<i64: 1, 1>}]} {
    %c0_i32 = arith.constant 0 : i32
    %0 = arith.cmpi eq, %arg0, %c0_i32 : i32
    %1 = arith.extui %0 : i1 to i32
    %c0_i32_0 = arith.constant 0 : i32
    %2 = arith.cmpi ne, %1, %c0_i32_0 : i32
    scf.if %2 {
      %cst_20 = arith.constant 0.000000e+00 : f32
      %40 = vector.broadcast %cst_20 : f32 to vector<16x1xf32>
      %c0_21 = arith.constant 0 : index
      %c0_22 = arith.constant 0 : index
      %41 = vector.load %arg8[%c0_21, %c0_22] : memref<16x1xf32, #tpu.memory_space<vmem>>, vector<16x1xf32>
      tpu.vector_store %arg8[%c0_21, %c0_22], %40 {strides = array<i32>} : memref<16x1xf32, #tpu.memory_space<vmem>>, vector<16x1xf32>,
    } else {
    }
    %c0 = arith.constant 0 : index
    %c0_1 = arith.constant 0 : index
    %3 = vector.load %arg2[%c0, %c0_1] : memref<16x256xbf16, #tpu.memory_space<vmem>>, vector<16x256xbf16>
    %4 = arith.extf %3 : vector<16x256xbf16> to vector<16x256xf32>
    %c0_2 = arith.constant 0 : index
    %c0_3 = arith.constant 0 : index
    %5 = vector.load %arg3[%c0_2, %c0_3] : memref<16x256xbf16, #tpu.memory_space<vmem>>, vector<16x256xbf16>
    %6 = arith.extf %5 : vector<16x256xbf16> to vector<16x256xf32>
    %c0_4 = arith.constant 0 : index
    %c0_5 = arith.constant 0 : index
    %7 = vector.load %arg4[%c0_4, %c0_5] : memref<16x256xbf16, #tpu.memory_space<vmem>>, vector<16x256xbf16>
    %8 = arith.extf %7 : vector<16x256xbf16> to vector<16x256xf32>
    %c0_6 = arith.constant 0 : index
    %c0_7 = arith.constant 0 : index
    %9 = vector.load %arg5[%c0_6, %c0_7] : memref<16x256xbf16, #tpu.memory_space<vmem>>, vector<16x256xbf16>
    %10 = arith.extf %9 : vector<16x256xbf16> to vector<16x256xf32>
    %c0_8 = arith.constant 0 : index
    %c0_9 = arith.constant 0 : index
    %11 = vector.load %arg6[%c0_8, %c0_9] : memref<16x256xbf16, #tpu.memory_space<vmem>>, vector<16x256xbf16>
    %12 = arith.extf %11 : vector<16x256xbf16> to vector<16x256xf32>
    %13 = arith.addf %4, %12 : vector<16x256xf32>
    %14 = arith.addf %8, %12 : vector<16x256xf32>
    %15 = arith.subf %13, %6 : vector<16x256xf32>
    %16 = math.absf %15 : vector<16x256xf32>
    %17 = arith.subf %13, %10 : vector<16x256xf32>
    %18 = math.absf %17 : vector<16x256xf32>
    %19 = arith.addf %16, %18 : vector<16x256xf32>
    %20 = arith.subf %14, %6 : vector<16x256xf32>
    %21 = math.absf %20 : vector<16x256xf32>
    %22 = arith.addf %19, %21 : vector<16x256xf32>
    %23 = arith.subf %14, %10 : vector<16x256xf32>
    %24 = math.absf %23 : vector<16x256xf32>
    %25 = arith.addf %22, %24 : vector<16x256xf32>
    %cst = arith.constant dense<0.000000e+00> : vector<16xf32>
    %26 = vector.multi_reduction <add>, %25, %cst [1] : vector<16x256xf32> to vector<16xf32>
    %27 = vector.shape_cast %26 : vector<16xf32> to vector<16x1xf32>
    %c0_10 = arith.constant 0 : index
    %c0_11 = arith.constant 0 : index
    %28 = vector.load %arg1[%c0_10, %c0_11] : memref<16x1xf32, #tpu.memory_space<vmem>>, vector<16x1xf32>
    %29 = arith.subf %28, %27 : vector<16x1xf32>
    %cst_12 = arith.constant 1.000000e+01 : f32
    %30 = vector.broadcast %cst_12 : f32 to vector<16x1xf32>
    %31 = arith.addf %29, %30 : vector<16x1xf32>
    %cst_13 = arith.constant 0.000000e+00 : f32
    %32 = vector.broadcast %cst_13 : f32 to vector<16x1xf32>
    %33 = arith.maximumf %31, %32 : vector<16x1xf32>
    %c0_14 = arith.constant 0 : index
    %c0_15 = arith.constant 0 : index
    %34 = vector.load %arg8[%c0_14, %c0_15] : memref<16x1xf32, #tpu.memory_space<vmem>>, vector<16x1xf32>
    %35 = arith.addf %34, %33 : vector<16x1xf32>
    %c0_16 = arith.constant 0 : index
    %c0_17 = arith.constant 0 : index
    %36 = vector.load %arg8[%c0_16, %c0_17] : memref<16x1xf32, #tpu.memory_space<vmem>>, vector<16x1xf32>
    tpu.vector_store %arg8[%c0_16, %c0_17], %35 {strides = array<i32>} : memref<16x1xf32, #tpu.memory_space<vmem>>, vector<16x1xf32>,
    %c0_i32_18 = arith.constant 0 : i32
    %37 = arith.cmpi eq, %arg0, %c0_i32_18 : i32
    %38 = arith.extui %37 : i1 to i32
    %c0_i32_19 = arith.constant 0 : i32
    %39 = arith.cmpi ne, %38, %c0_i32_19 : i32
    scf.if %39 {
      %c0_20 = arith.constant 0 : index
      %c0_21 = arith.constant 0 : index
      %40 = vector.load %arg8[%c0_20, %c0_21] : memref<16x1xf32, #tpu.memory_space<vmem>>, vector<16x1xf32>
      %41 = vector.shape_cast %40 : vector<16x1xf32> to vector<1x16x1xf32>
      %cst_22 = arith.constant dense<0.000000e+00> : vector<1xf32>
      %42 = vector.multi_reduction <add>, %41, %cst_22 [1, 2] : vector<1x16x1xf32> to vector<1xf32>
      %43 = vector.shape_cast %42 : vector<1xf32> to vector<1x1x1xf32>
      %44 = vector.extract %43[0, 0, 0] : f32 from vector<1x1x1xf32>
      %45 = vector.broadcast %44 : f32 to vector<1x1xf32>
      %c0_23 = arith.constant 0 : index
      %c0_24 = arith.constant 0 : index
      %46 = vector.load %arg7[%c0_23, %c0_24] : memref<1x1xf32, #tpu.memory_space<vmem>>, vector<1x1xf32>
      tpu.vector_store %arg7[%c0_23, %c0_24], %45 {strides = array<i32>} : memref<1x1xf32, #tpu.memory_space<vmem>>, vector<1x1xf32>,
    } else {
    }
    return
  }
  func.func @transform_0(%arg0: i32) -> (i32, i32) {
    %c0_i32 = arith.constant 0 : i32
    %c0_i32_0 = arith.constant 0 : i32
    return %arg0, %c0_i32 : i32, i32
  }
  func.func @transform_1(%arg0: i32) -> (i32, i32) {
    %c0_i32 = arith.constant 0 : i32
    %c0_i32_0 = arith.constant 0 : i32
    return %arg0, %c0_i32 : i32, i32
  }
  func.func @transform_2(%arg0: i32) -> (i32, i32) {
    %c0_i32 = arith.constant 0 : i32
    %c0_i32_0 = arith.constant 0 : i32
    return %arg0, %c0_i32 : i32, i32
  }
  func.func @transform_3(%arg0: i32) -> (i32, i32) {
    %c0_i32 = arith.constant 0 : i32
    %c0_i32_0 = arith.constant 0 : i32
    return %arg0, %c0_i32 : i32, i32
  }
  func.func @transform_4(%arg0: i32) -> (i32, i32) {
    %c0_i32 = arith.constant 0 : i32
    %c0_i32_0 = arith.constant 0 : i32
    return %arg0, %c0_i32 : i32, i32
  }
  func.func @transform_5(%arg0: i32) -> (i32, i32) {
    %c0_i32 = arith.constant 0 : i32
    %c0_i32_0 = arith.constant 0 : i32
    return %arg0, %c0_i32 : i32, i32
  }
  func.func @transform_6(%arg0: i32) -> (i32, i32) {
    %c0_i32 = arith.constant 0 : i32
    %c0_i32_0 = arith.constant 0 : i32
    %c0_i32_1 = arith.constant 0 : i32
    return %c0_i32, %c0_i32_0 : i32, i32
  }
}

</mosaic_0001>

<bundles_post_ra>
// kernel: tpu_custom_call.1
= control target key start
LH: loop header
LB: loop body
LE: loop exit
PB: predicated region body
PF: predicated region fallthrough
CT: control target
= control target key end

     0   :  { %11 = vsyncpa [#allocation4], 0  ;;  %s432_s0 = inlined_call_operand.vmem [shape: f32[16,1], index: 0, kind: input, shape index: {}]   ;;  %s433_s1 = inlined_call_operand.vmem [shape: bf16[16,256], index: 1, kind: input, shape index: {}]   ;;  %s434_s2 = inlined_call_operand.hbm [shape: bf16[16,256], index: 2, kind: input, shape index: {}]   ;;  %s435_s3 = inlined_call_operand.hbm [shape: bf16[16,256], index: 3, kind: input, shape index: {}]   ;;  %s436_s4 = inlined_call_operand.hbm [shape: bf16[16,256], index: 4, kind: input, shape index: {}]   ;;  %s437_s5 = inlined_call_operand.hbm [shape: bf16[16,256], index: 5, kind: input, shape index: {}]   ;;  %s438_s6 = inlined_call_operand.hbm [shape: f32[1,1], index: 6, kind: output, shape index: {}]  }
   0x1   :  { %12 = vsyncpa [#allocation7], 0 }
   0x2   :  { %13 = vsyncpa [#allocation10], 0 }
   0x3   :  { %14 = vsyncpa [#allocation5], 0  ;;  %s344_s21 = smov [#allocation6]   ;;  %s345_s23 = smov [#allocation3]  }
   0x4   :  { %s36_s22 = sshll.u32 %s344_s21, 4  ;;  %s24_s24 = sshll.u32 %s345_s23, 4  ;;  %s37_s22 = int_to_ptr.vmem [resolvable:$true] %s36_s22  ;;  %s25_s24 = int_to_ptr.vmem [resolvable:$true] %s24_s24 }
   0x5   :  { %s244_s25 = scalar_lea.vmem %s37_s22, 256  ;;  %p249_p1 = scmp.lt.s32.totalorder %s37_s22, %s37_s22 }
   0x6   :  { %p245_p0 = scmp.ne.s32.totalorder %s37_s22, %s244_s25  ;;  %p250_p2 = scmp.lt.s32.totalorder %s244_s25, %s244_s25 }
   0x8   :  { %p251_p3 = por %p250_p2, %p249_p1 }
   0xa   :  { %p252_p4 = pnand %p251_p3, %p245_p0 }
   0xc   :  { %255 = shalt.err (!%p252_p4)
}
   0xd   :  { %s346_s26 = smov 128   ;;  %s347_s27 = smov 8  }
   0xe   :  { %42 = dma.hbm_to_vmem [thread:$0]  %s435_s3, 256, %s37_s22, [#allocation7], %s346_s26, %s346_s26, %s347_s27  }
   0xf   :  { %s264_s30 = scalar_lea.vmem %s25_s24, 256  ;;  %p269_p6 = scmp.lt.s32.totalorder %s25_s24, %s25_s24 }
  0x10   :  { %p265_p5 = scmp.ne.s32.totalorder %s25_s24, %s264_s30  ;;  %p270_p7 = scmp.lt.s32.totalorder %s264_s30, %s264_s30 }
  0x12   :  { %p271_p8 = por %p270_p7, %p269_p6 }
  0x14   :  { %p272_p9 = pnand %p271_p8, %p265_p5 }
  0x16   :  { %275 = shalt.err (!%p272_p9)
}
  0x17   :  { %30 = dma.hbm_to_vmem [thread:$0]  %s434_s2, 256, %s25_s24, [#allocation4], %s346_s26, %s346_s26, %s347_s27  }
  0x18   :  { %s348_s9 = smov [#allocation8]   ;;  %s349_s11 = smov [#allocation9]  }
  0x19   :  { %s48_s10 = sshll.u32 %s348_s9, 4  ;;  %s60_s12 = sshll.u32 %s349_s11, 4  ;;  %s49_s10 = int_to_ptr.vmem [resolvable:$true] %s48_s10  ;;  %s61_s12 = int_to_ptr.vmem [resolvable:$true] %s60_s12 }
  0x1a   :  { %s284_s3 = scalar_lea.vmem %s49_s10, 256  ;;  %p289_p11 = scmp.lt.s32.totalorder %s49_s10, %s49_s10 }
  0x1b   :  { %p285_p10 = scmp.ne.s32.totalorder %s49_s10, %s284_s3  ;;  %p290_p12 = scmp.lt.s32.totalorder %s284_s3, %s284_s3 }
  0x1d   :  { %p291_p13 = por %p290_p12, %p289_p11 }
  0x1f   :  { %p292_p0 = pnand %p291_p13, %p285_p10 }
  0x21   :  { %295 = shalt.err (!%p292_p0)
}
  0x22   :  { %54 = dma.hbm_to_vmem [thread:$0]  %s436_s4, 256, %s49_s10, [#allocation7], %s346_s26, %s346_s26, %s347_s27  }
  0x23   :  { %s304_s2 = scalar_lea.vmem %s61_s12, 256  ;;  %p309_p2 = scmp.lt.s32.totalorder %s61_s12, %s61_s12 }
  0x24   :  { %p305_p1 = scmp.ne.s32.totalorder %s61_s12, %s304_s2  ;;  %p310_p3 = scmp.lt.s32.totalorder %s304_s2, %s304_s2 }
  0x26   :  { %p311_p4 = por %p310_p3, %p309_p2 }
  0x28   :  { %p312_p5 = pnand %p311_p4, %p305_p1 }
  0x2a   :  { %315 = shalt.err (!%p312_p5)
}
  0x2b   :  { %66 = dma.hbm_to_vmem [thread:$0]  %s437_s5, 256, %s61_s12, [#allocation10], %s346_s26, %s346_s26, %s347_s27  }
  0x2c   :  { %336 = dma.done.wait [#allocation4], 256  }
  0x2d   :  { %337 = vsyncadd [#allocation4], 4294967040 }
  0x2e   :  { %338 = dma.done.wait [#allocation7], 512  }
  0x2f   :  { %339 = vsyncadd [#allocation7], 4294966784 }
  0x30   :  { %340 = dma.done.wait [#allocation10], 256  }
  0x31   :  { %341 = vsyncadd [#allocation10], 4294967040  ;;  %vm83_vm0 = vcmask 7168   ;;  %v350_v0 = vmov 0.0   ;;  %v86_v1 = vld [vmem:[%s433_s1] sm:$0xff]  ;;  %v92_v2 = vld [vmem:[#allocation3] sm:$0xff] }
  0x32   :  { %84 = vst.msk [vmem:[#allocation2] sm:$0xff] %vm83_vm0, %v350_v0  ;;  %85 = vst.msk [vmem:[#allocation2 + $0x8] sm:$0xff] %vm83_vm0, %v350_v0  ;;  %v98_v3 = vld [vmem:[#allocation6] sm:$0xff]  ;;  %v88_v4 = vunpack.c.l.bf16 %v86_v1  ;;  %v89_v5 = vunpack.c.h.bf16 %v86_v1  ;;  %v94_v6 = vunpack.c.l.bf16 %v92_v2  ;;  %v95_v7 = vunpack.c.h.bf16 %v92_v2  ;;  %v104_v8 = vld [vmem:[#allocation8] sm:$0xff] }
  0x33   :  { %v110_v9 = vld [vmem:[#allocation9] sm:$0xff]  ;;  %v87_v10 = vld [vmem:[%s433_s1 + $0x8] sm:$0xff]  ;;  %v100_v11 = vunpack.c.l.bf16 %v98_v3  ;;  %v101_v12 = vunpack.c.h.bf16 %v98_v3  ;;  %v106_v13 = vunpack.c.l.bf16 %v104_v8  ;;  %v107_v14 = vunpack.c.h.bf16 %v104_v8  ;;  %v93_v15 = vld [vmem:[#allocation3 + $0x8] sm:$0xff] }
  0x34   :  { %v99_v16 = vld [vmem:[#allocation6 + $0x8] sm:$0xff]  ;;  %v112_v17 = vunpack.c.l.bf16 %v110_v9  ;;  %v113_v18 = vunpack.c.h.bf16 %v110_v9  ;;  %v90_v19 = vunpack.c.l.bf16 %v87_v10  ;;  %v91_v20 = vunpack.c.h.bf16 %v87_v10  ;;  %v105_v21 = vld [vmem:[#allocation8 + $0x8] sm:$0xff] }
  0x35   :  { %v111_v22 = vld [vmem:[#allocation9 + $0x8] sm:$0xff]  ;;  %v96_v23 = vunpack.c.l.bf16 %v93_v15  ;;  %v97_v24 = vunpack.c.h.bf16 %v93_v15  ;;  %v102_v25 = vunpack.c.l.bf16 %v99_v16  ;;  %v103_v26 = vunpack.c.h.bf16 %v99_v16 }
  0x36   :  { %v116_v27 = vadd.f32 %v112_v17, %v88_v4  ;;  %v117_v28 = vadd.f32 %v113_v18, %v89_v5  ;;  %v120_v29 = vadd.f32 %v112_v17, %v100_v11  ;;  %v121_v30 = vadd.f32 %v113_v18, %v101_v12 }
  0x37   :  { %v108_v31 = vunpack.c.l.bf16 %v105_v21  ;;  %v109_v32 = vunpack.c.h.bf16 %v105_v21  ;;  %v114_v33 = vunpack.c.l.bf16 %v111_v22  ;;  %v115_v34 = vunpack.c.h.bf16 %v111_v22  ;;  %v174_v21 = vld [vmem:[%s432_s0] sm:$0xff] }
  0x38   :  { %v124_v35 = vsub.f32 %v116_v27, %v94_v6  ;;  %v125_v36 = vsub.f32 %v117_v28, %v95_v7  ;;  %v132_v37 = vsub.f32 %v116_v27, %v106_v13  ;;  %v133_v38 = vsub.f32 %v117_v28, %v107_v14 }
  0x39   :  { %v144_v39 = vsub.f32 %v120_v29, %v94_v6  ;;  %v145_v40 = vsub.f32 %v121_v30, %v95_v7  ;;  %v156_v41 = vsub.f32 %v120_v29, %v106_v13  ;;  %v157_v42 = vsub.f32 %v121_v30, %v107_v14 }
  0x3a   :  { %v128_v43 = vand.u32 2147483647, %v124_v35  ;;  %v129_v44 = vand.u32 2147483647, %v125_v36  ;;  %v136_v45 = vand.u32 2147483647, %v132_v37  ;;  %v118_v46 = vadd.f32 %v114_v33, %v90_v19 }
  0x3b   :  { %v137_v47 = vand.u32 2147483647, %v133_v38  ;;  %v148_v48 = vand.u32 2147483647, %v144_v39  ;;  %v149_v49 = vand.u32 2147483647, %v145_v40  ;;  %v119_v50 = vadd.f32 %v115_v34, %v91_v20 }
  0x3c   :  { %v140_v51 = vadd.f32 %v136_v45, %v128_v43  ;;  %v160_v52 = vand.u32 2147483647, %v156_v41  ;;  %v161_v53 = vand.u32 2147483647, %v157_v42  ;;  %v122_v54 = vadd.f32 %v114_v33, %v102_v25  ;;  %v175_v25 = vld [vmem:[%s432_s0 + $0x8] sm:$0xff]  ;;  %s351_s0 = smov [#allocation11]  }
  0x3d   :  { %v141_v55 = vadd.f32 %v137_v47, %v129_v44  ;;  %v123_v56 = vadd.f32 %v115_v34, %v103_v26  ;;  %v126_v57 = vsub.f32 %v118_v46, %v96_v23  ;;  %v127_v58 = vsub.f32 %v119_v50, %v97_v24  ;;  %v182_v26 = vld [vmem:[#allocation2] sm:$0xff]  ;;  %s215_s22 = sshll.u32 %s351_s0, 4  ;;  %s216_s22 = int_to_ptr.vmem [resolvable:$true] %s215_s22 }
  0x3e   :  { %v152_v59 = vadd.f32 %v148_v48, %v140_v51  ;;  %v134_v60 = vsub.f32 %v118_v46, %v108_v31  ;;  %v135_v61 = vsub.f32 %v119_v50, %v109_v32  ;;  %v146_v62 = vsub.f32 %v122_v54, %v96_v23  ;;  %s316_s24 = scalar_lea.vmem %s216_s22, 16  ;;  %s320_s25 = scalar_lea.vmem %s216_s22, 32 }
  0x3f   :  { %v153_v63 = vadd.f32 %v149_v49, %v141_v55  ;;  %v130_v0 = vand.u32 2147483647, %v126_v57  ;;  %v131_v1 = vand.u32 2147483647, %v127_v58  ;;  %v147_v2 = vsub.f32 %v123_v56, %v97_v24  ;;  %p317_p6 = scmp.ne.s32.totalorder %s216_s22, %s316_s24  ;;  %p321_p7 = scmp.lt.s32.totalorder %s216_s22, %s216_s22 }
  0x40   :  { %v164_v3 = vadd.f32 %v160_v52, %v152_v59  ;;  %v138_v4 = vand.u32 2147483647, %v134_v60  ;;  %v139_v5 = vand.u32 2147483647, %v135_v61  ;;  %v150_v6 = vand.u32 2147483647, %v146_v62  ;;  %p322_p8 = scmp.lt.s32.totalorder %s320_s25, %s316_s24 }
  0x41   :  { %v165_v7 = vadd.f32 %v161_v53, %v153_v63  ;;  %v151_v8 = vand.u32 2147483647, %v147_v2  ;;  %v158_v9 = vsub.f32 %v122_v54, %v108_v31  ;;  %v159_v10 = vsub.f32 %v123_v56, %v109_v32  ;;  %v183_v32 = vld [vmem:[#allocation2 + $0x8] sm:$0xff] }
  0x42   :  { %v142_v11 = vadd.f32 %v138_v4, %v130_v0  ;;  %v143_v12 = vadd.f32 %v139_v5, %v131_v1  ;;  %vm207_vm1 = vcmask 0   ;;  %p323_p9 = por %p322_p8, %p321_p7 }
  0x43   :  { %v168_v13 = vadd.f32 %v165_v7, %v164_v3  ;;  %v162_v14 = vand.u32 2147483647, %v158_v9  ;;  %v163_v15 = vand.u32 2147483647, %v159_v10 }
  0x44   :  { %v154_v16 = vadd.f32 %v150_v6, %v142_v11  ;;  %v155_v17 = vadd.f32 %v151_v8, %v143_v12  ;;  %p324_p10 = pnand %p323_p9, %p317_p6 }
  0x45   :  { %169 = vadd.xlane.f32.xlu0 %v168_v13 }
  0x46   :  { %v166_v18 = vadd.f32 %v162_v14, %v154_v16  ;;  %v167_v19 = vadd.f32 %v163_v15, %v155_v17 }
  0x48   :  { %v171_v20 = vadd.f32 %v167_v19, %v166_v18 }
  0x4a   :  { %172 = vadd.xlane.f32.xlu0 %v171_v20 }
  0xce   :  { %v170_v22 = vpop.xlane.xlu0 %169 }
  0xcf   :  { %v176_v23 = vsub.f32 %v174_v21, %v170_v22 }
  0xd1   :  { %v178_v24 = vadd.f32 10.0, %v176_v23 }
  0xd3   :  { %v180_v27 = vmax.f32 %v178_v24, 0.0  ;;  %v173_v28 = vpop.xlane.xlu0 %172 }
  0xd4   :  { %v177_v29 = vsub.f32 %v175_v25, %v173_v28 }
  0xd5   :  { %v184_v30 = vadd.f32 %v182_v26, %v180_v27 }
  0xd6   :  { %v179_v31 = vadd.f32 10.0, %v177_v29 }
  0xd7   :  { %187 = vst.msk [vmem:[#allocation2] sm:$0xff] %vm83_vm0, %v184_v30 }
  0xd8   :  { %v181_v33 = vmax.f32 %v179_v31, 0.0 }
  0xda   :  { %v185_v34 = vadd.f32 %v183_v32, %v181_v33 }
  0xdc   :  { %188 = vst.msk [vmem:[#allocation2 + $0x8] sm:$0xff] %vm83_vm0, %v185_v34 }
  0xde   :  { %v192_v35 = vld [vmem:[#allocation2] sm:$0xff] }
  0xdf   :  { %v194_v37 = vsel %vm83_vm0, %v192_v35, 0.0 }
  0xe3   :  { %v193_v36 = vld [vmem:[#allocation2 + $0x8] sm:$0xff] }
  0xe4   :  { %v195_v38 = vsel %vm83_vm0, %v193_v36, 0.0 }
  0xe5   :  { %v196_v39 = vadd.f32 %v195_v38, %v194_v37 }
  0xe7   :  { %197 = vadd.xlane.f32.xlu1 %v196_v39 }
 0x170   :  { %v198_v40 = vpop.xlane.xlu1 %197 }
 0x171   :  { %v199_v41 = vrot.slane %v198_v40, 4 }
 0x173   :  { %v200_v42 = vadd.f32 %v199_v41, %v198_v40 }
 0x175   :  { %v201_v43 = vrot.slane %v200_v42, 2 }
 0x177   :  { %v202_v44 = vadd.f32 %v201_v43, %v200_v42 }
 0x179   :  { %v203_v45 = vrot.slane %v202_v44, 1 }
 0x17b   :  { %v204_v46 = vadd.f32 %v203_v45, %v202_v44 }
 0x17d   :  { %226 = vpush %v204_v46 }
 0x1ae   :  { %s227_s23 = spop %226 }
 0x1af   :  { %v206_v47 = vstv %s227_s23 }
 0x1b0   :  { %208 = vst.msk [vmem:[#allocation11] sm:$0x1] %vm207_vm1, %v206_v47 }
 0x1b1   :  { %327 = shalt.err (!%p324_p10)
}
 0x1b2   :  { %218 = dma.vmem_to_hbm [thread:$0]  %s216_s22, 16, %s438_s6, [#allocation5]  }
 0x1b3   :  { %342 = dma.done.wait [#allocation5], 16  }
 0x1b4   :  { %343 = vsyncadd [#allocation5], 4294967280 }
 0x1b5   :  { %222 = vsyncpa [#allocation4], 1 }
 0x1b6   :  { %223 = vsyncpa [#allocation7], 1 }
 0x1b7   :  { %224 = vsyncpa [#allocation10], 1 }
 0x1b8   :  { %225 = vsyncpa [#allocation5], 1 }

</bundles_post_ra>
